<compile_context>
chip_gen: v6e
topology: v6e:2x2x1
jax: 0.10.0
libtpu: 0.0.40
codegen_flags: <defaults>
</compile_context>

<pallas_src>
import functools

import jax
import jax.numpy as jnp
from jax.experimental import pallas as pl
from jax.experimental.pallas import tpu as pltpu


def bottleneck_kernel(x_ref, sb1_ref, w1_ref, b2_ref, w2_ref, mask_ref, out_ref,
                      *, W, mxu_dtype, tap_dtype, group_by_row):
    # x_ref   : (Cin, L)        channel-major, L = Nb*H*W (batch folded into lanes)
    # sb1_ref : (Cin, 2)  f32   folded BN1 [scale | bias]
    # w1_ref  : (C1, Cin)       1x1 conv weights, BN2 scale folded, mxu_dtype
    # b2_ref  : (C1, 1)   f32   folded BN2 bias
    # w2_ref  : (G_pad, 9*C1)   3x3 conv weights, col = (ky*3+kx)*C1 + c, mxu_dtype
    # mask_ref: (9, L)          0/1 boundary-mask multipliers, tap_dtype
    # out_ref : (G_pad, L)      conv2 output only (concat with x happens outside)
    C1 = w1_ref.shape[0]
    L = x_ref.shape[1]

    # ---- BN1 (folded affine) + ReLU ---------------------------------------
    x = x_ref[...].astype(jnp.float32)                            # (Cin, L)
    h = jnp.maximum(x * sb1_ref[:, 0:1] + sb1_ref[:, 1:2], 0.0)

    # ---- conv1 (1x1) with BN2 scale folded, + bias + ReLU ------------------
    h2 = jnp.dot(w1_ref[...], h.astype(mxu_dtype),
                 preferred_element_type=jnp.float32)               # (C1, L)
    h2 = jnp.maximum(h2 + b2_ref[...], 0.0).astype(tap_dtype)

    # ---- conv2 (3x3, pad=1) as masked-roll im2col matmul -------------------
    def tap(k):                                                    # k = (dy+1)*3 + (dx+1)
        dy, dx = divmod(k, 3)
        off = (dy - 1) * W + (dx - 1)                              # tap[p] = h2[p + off]
        t = h2 if off == 0 else pltpu.roll(h2, shift=(-off) % L, axis=1)
        return t * mask_ref[k:k + 1, :]                            # zero across boundaries

    if group_by_row:
        # Large C1: 3 accumulating dots (K = 3*C1 each); only one kernel row of
        # taps is live at a time -> ~3x smaller VMEM working set.
        out = jnp.zeros(out_ref.shape, jnp.float32)
        for ky in range(3):
            blk = jnp.concatenate([tap(3 * ky + kx) for kx in range(3)], axis=0)
            out += jnp.dot(w2_ref[:, 3 * ky * C1:(3 * ky + 3) * C1],
                           blk.astype(mxu_dtype),
                           preferred_element_type=jnp.float32)
    else:
        # Small C1 (demo): one big K = 9*C1 dot.
        im2col = jnp.concatenate([tap(k) for k in range(9)], axis=0)   # (9*C1, L)
        out = jnp.dot(w2_ref[...], im2col.astype(mxu_dtype),
                      preferred_element_type=jnp.float32)              # (G_pad, L)

    out_ref[...] = out.astype(out_ref.dtype)


def bottleneck_forward(x_nchw, params, eps=1e-5, mxu_dtype=jnp.float32,
                       tap_dtype=None, batch_block=None, group_taps_by_row=None):
    (g1, b1, m1, v1, w1, g2, b2, m2, v2, w2) = params
    N, Cin, H, W = x_nchw.shape
    C1 = w1.shape[0]           # 4 * growth_rate
    G = w2.shape[0]            # growth_rate
    HW = H * W

    if tap_dtype is None:
        tap_dtype = mxu_dtype      # v6e/v7x: bf16 taps.  v5e: pass tap_dtype=f32.
    Nb = N if batch_block is None else batch_block
    assert N % Nb == 0, "batch_block must divide N"
    L = Nb * HW
    if group_taps_by_row is None:
        group_taps_by_row = C1 >= 128   # demo C1=16 -> single big-K dot

    out_dtype = x_nchw.dtype
    sub = 8 if jnp.dtype(out_dtype).itemsize == 4 else 16
    G_pad = ((G + sub - 1) // sub) * sub    # sublane-aligned output rows

    # ---- fold BatchNorm (inference mode) into scale / bias -----------------
    s1 = g1 / jnp.sqrt(v1 + eps)
    bb1 = b1 - m1 * s1
    s2 = g2 / jnp.sqrt(v2 + eps)
    bb2 = b2 - m2 * s2

    sb1 = jnp.stack([s1, bb1], axis=1).astype(jnp.float32)           # (Cin, 2)
    w1s = (w1[:, :, 0, 0] * s2[:, None]).astype(mxu_dtype)           # (C1, Cin)
    b2c = bb2.reshape(C1, 1).astype(jnp.float32)                     # (C1, 1)
    w2f = jnp.transpose(w2, (0, 2, 3, 1)).reshape(G, 9 * C1)         # (G, 9*C1)
    w2p = jnp.zeros((G_pad, 9 * C1), w2f.dtype).at[:G].set(w2f).astype(mxu_dtype)

    # ---- precomputed 0/1 boundary-mask multipliers, tiled over Nb images ----
    q = jnp.arange(HW, dtype=jnp.int32)
    row, col = q // W, q % W
    masks = []
    for dy in (-1, 0, 1):
        for dx in (-1, 0, 1):
            masks.append((row + dy >= 0) & (row + dy < H) &
                         (col + dx >= 0) & (col + dx < W))
    mask = jnp.tile(jnp.stack(masks, axis=0).astype(tap_dtype), (1, Nb))   # (9, L)

    # channel-major with the batch folded into the lane axis: (Cin, N*HW)
    x_cm = jnp.transpose(x_nchw.reshape(N, Cin, HW), (1, 0, 2)).reshape(Cin, N * HW)

    kernel = functools.partial(bottleneck_kernel, W=W, mxu_dtype=mxu_dtype,
                               tap_dtype=tap_dtype, group_by_row=group_taps_by_row)

    nbytes = lambda a: a.size * a.dtype.itemsize
    cost = pl.CostEstimate(
        flops=int(2 * N * HW * (C1 * Cin + G_pad * 9 * C1)),
        transcendentals=0,
        bytes_accessed=int(nbytes(x_cm) + nbytes(sb1) + nbytes(w1s) + nbytes(b2c) +
                           nbytes(w2p) + nbytes(mask) +
                           G_pad * N * HW * jnp.dtype(out_dtype).itemsize))

    conv_out = pl.pallas_call(
        kernel,
        out_shape=jax.ShapeDtypeStruct((G_pad, N * HW), out_dtype),
        grid=(N // Nb,),
        in_specs=[
            pl.BlockSpec((Cin, L), lambda i: (0, i)),
            pl.BlockSpec((Cin, 2), lambda i: (0, 0)),
            pl.BlockSpec((C1, Cin), lambda i: (0, 0)),
            pl.BlockSpec((C1, 1), lambda i: (0, 0)),
            pl.BlockSpec((G_pad, 9 * C1), lambda i: (0, 0)),
            pl.BlockSpec((9, L), lambda i: (0, 0)),
        ],
        out_specs=pl.BlockSpec((G_pad, L), lambda i: (0, i)),
        compiler_params=pltpu.CompilerParams(
            dimension_semantics=("parallel",)),
        cost_estimate=cost,
    )(x_cm, sb1, w1s, b2c, w2p, mask)

    # slice off sublane padding, restore NCHW, concat with x (all XLA-side).
    out_g = conv_out[:G].reshape(G, N, H, W).transpose(1, 0, 2, 3)
    return jnp.concatenate([out_g, x_nchw], axis=1)


def bottleneck_reference(x, params, eps=1e-5):
    """Pure-JAX reference (same eval-mode BN semantics) for verification."""
    (g1, b1, m1, v1, w1, g2, b2, m2, v2, w2) = params

    def bn(h, g, b, m, v):
        return ((h - m[None, :, None, None]) / jnp.sqrt(v + eps)[None, :, None, None]
                * g[None, :, None, None] + b[None, :, None, None])

    h = jnp.maximum(bn(x, g1, b1, m1, v1), 0.0)
    h = jax.lax.conv_general_dilated(h, w1, (1, 1), 'VALID',
                                     dimension_numbers=('NCHW', 'OIHW', 'NCHW'))
    h = jnp.maximum(bn(h, g2, b2, m2, v2), 0.0)
    h = jax.lax.conv_general_dilated(h, w2, (1, 1), ((1, 1), (1, 1)),
                                     dimension_numbers=('NCHW', 'OIHW', 'NCHW'))
    return jnp.concatenate([h, x], axis=1)


if __name__ == "__main__":
    in_planes, growth_rate = 4, 4
    N, H, W = 2, 16, 16
    C1 = 4 * growth_rate

    key = jax.random.PRNGKey(0)
    ks = jax.random.split(key, 11)

    x = jax.random.normal(ks[0], (N, in_planes, H, W), jnp.float32)

    # Deterministic parameter init (shapes match the PyTorch module).
    g1 = jax.random.uniform(ks[1], (in_planes,), jnp.float32, 0.5, 1.5)
    b1 = jax.random.normal(ks[2], (in_planes,), jnp.float32) * 0.1
    m1 = jax.random.normal(ks[3], (in_planes,), jnp.float32) * 0.1
    v1 = jax.random.uniform(ks[4], (in_planes,), jnp.float32, 0.5, 1.5)
    w1 = jax.random.normal(ks[5], (C1, in_planes, 1, 1), jnp.float32) * 0.2

    g2 = jax.random.uniform(ks[6], (C1,), jnp.float32, 0.5, 1.5)
    b2 = jax.random.normal(ks[7], (C1,), jnp.float32) * 0.1
    m2 = jax.random.normal(ks[8], (C1,), jnp.float32) * 0.1
    v2 = jax.random.uniform(ks[9], (C1,), jnp.float32, 0.5, 1.5)
    w2 = jax.random.normal(ks[10], (growth_rate, C1, 3, 3), jnp.float32) * 0.1

    params = (g1, b1, m1, v1, w1, g2, b2, m2, v2, w2)

    ref = bottleneck_reference(x, params)

    # f32 MXU path (exact), single big-K dot, whole batch folded into lanes.
    out = jax.block_until_ready(bottleneck_forward(x, params))
    assert out.shape == (N, growth_rate + in_planes, H, W), out.shape
    assert jnp.allclose(out, ref, atol=2e-4, rtol=2e-4), \
        float(jnp.max(jnp.abs(out - ref)))

    # f32, grouped-by-kernel-row accumulation path (production C1>=128 path).
    out_grp = jax.block_until_ready(
        bottleneck_forward(x, params, group_taps_by_row=True))
    assert jnp.allclose(out_grp, ref, atol=2e-4, rtol=2e-4), \
        float(jnp.max(jnp.abs(out_grp - ref)))

    # bf16 MXU + bf16 taps (v6e/v7x fast path), f32 accumulation.
    out_bf16 = jax.block_until_ready(
        bottleneck_forward(x, params, mxu_dtype=jnp.bfloat16))
    assert jnp.allclose(out_bf16, ref, atol=5e-2, rtol=5e-2), \
        float(jnp.max(jnp.abs(out_bf16 - ref)))

    # bf16 MXU with f32 taps/elementwise (v5e: full-rate bf16 MXU, no bf16 VALU).
    out_v5e = jax.block_until_ready(
        bottleneck_forward(x, params, mxu_dtype=jnp.bfloat16,
                           tap_dtype=jnp.float32))
    assert jnp.allclose(out_v5e, ref, atol=5e-2, rtol=5e-2), \
        float(jnp.max(jnp.abs(out_v5e - ref)))

    # per-image grid (batch_block=1) still correct (v7x 2-TC sharding option).
    out_b1 = jax.block_until_ready(bottleneck_forward(x, params, batch_block=1))
    assert jnp.allclose(out_b1, ref, atol=2e-4, rtol=2e-4), \
        float(jnp.max(jnp.abs(out_b1 - ref)))

    print("KERNEL_OK")
</pallas_src>

<mosaic_0001>
module attributes {stable_mosaic.version = 11 : i64} {
  func.func @bottleneck_kernel(%arg0: i32, %arg1: memref<4x512xf32, #tpu.memory_space<vmem>>, %arg2: memref<4x2xf32, #tpu.memory_space<vmem>>, %arg3: memref<16x4xf32, #tpu.memory_space<vmem>>, %arg4: memref<16x1xf32, #tpu.memory_space<vmem>>, %arg5: memref<8x144xf32, #tpu.memory_space<vmem>>, %arg6: memref<9x512xf32, #tpu.memory_space<vmem>>, %arg7: memref<8x512xf32, #tpu.memory_space<vmem>>) attributes {dimension_semantics = [#tpu.dimension_semantics<parallel>], iteration_bounds = array<i64: 1>, scalar_prefetch = 0 : i64, scratch_operands = 0 : i64, tpu.core_type = #tpu.core_type<tc>, window_params = [{transform_indices = @transform_0, window_bounds = array<i64: 4, 512>}, {pipeline_mode = #tpu.pipeline_mode<synchronous>, transform_indices = @transform_1, window_bounds = array<i64: 4, 2>}, {pipeline_mode = #tpu.pipeline_mode<synchronous>, transform_indices = @transform_2, window_bounds = array<i64: 16, 4>}, {pipeline_mode = #tpu.pipeline_mode<synchronous>, transform_indices = @transform_3, window_bounds = array<i64: 16, 1>}, {pipeline_mode = #tpu.pipeline_mode<synchronous>, transform_indices = @transform_4, window_bounds = array<i64: 8, 144>}, {pipeline_mode = #tpu.pipeline_mode<synchronous>, transform_indices = @transform_5, window_bounds = array<i64: 9, 512>}, {transform_indices = @transform_6, window_bounds = array<i64: 8, 512>}]} {
    %c0 = arith.constant 0 : index
    %c0_0 = arith.constant 0 : index
    %0 = vector.load %arg1[%c0, %c0_0] : memref<4x512xf32, #tpu.memory_space<vmem>>, vector<4x512xf32>
    %c0_1 = arith.constant 0 : index
    %c0_2 = arith.constant 0 : index
    %1 = vector.load %arg2[%c0_1, %c0_2] : memref<4x2xf32, #tpu.memory_space<vmem>>, vector<4x1xf32>
    %2 = vector.broadcast %1 : vector<4x1xf32> to vector<4x512xf32>
    %3 = arith.mulf %0, %2 : vector<4x512xf32>
    %c0_3 = arith.constant 0 : index
    %c1 = arith.constant 1 : index
    %4 = vector.load %arg2[%c0_3, %c1] : memref<4x2xf32, #tpu.memory_space<vmem>>, vector<4x1xf32>
    %5 = vector.broadcast %4 : vector<4x1xf32> to vector<4x512xf32>
    %6 = arith.addf %3, %5 : vector<4x512xf32>
    %cst = arith.constant 0.000000e+00 : f32
    %7 = vector.broadcast %cst : f32 to vector<4x512xf32>
    %8 = arith.maximumf %6, %7 : vector<4x512xf32>
    %c0_4 = arith.constant 0 : index
    %c0_5 = arith.constant 0 : index
    %9 = vector.load %arg3[%c0_4, %c0_5] : memref<16x4xf32, #tpu.memory_space<vmem>>, vector<16x4xf32>
    %cst_6 = arith.constant dense<0.000000e+00> : vector<16x512xf32>
    %10 = tpu.matmul %9, %8, %cst_6 {dimension_numbers = #tpu.dot_dimension_numbers<[1], [0], [0], [1], [0, 0, 1, 1], [], []>} : vector<16x4xf32>, vector<4x512xf32>, vector<16x512xf32> -> vector<16x512xf32>
    %c0_7 = arith.constant 0 : index
    %c0_8 = arith.constant 0 : index
    %11 = vector.load %arg4[%c0_7, %c0_8] : memref<16x1xf32, #tpu.memory_space<vmem>>, vector<16x1xf32>
    %12 = vector.broadcast %11 : vector<16x1xf32> to vector<16x512xf32>
    %13 = arith.addf %10, %12 : vector<16x512xf32>
    %cst_9 = arith.constant 0.000000e+00 : f32
    %14 = vector.broadcast %cst_9 : f32 to vector<16x512xf32>
    %15 = arith.maximumf %13, %14 : vector<16x512xf32>
    %c17_i32 = arith.constant 17 : i32
    %16 = tpu.dynamic_rotate %15 by %c17_i32 dim 1 : vector<16x512xf32>, i32 -> vector<16x512xf32>
    %c0_10 = arith.constant 0 : index
    %c0_11 = arith.constant 0 : index
    %17 = vector.load %arg6[%c0_10, %c0_11] : memref<9x512xf32, #tpu.memory_space<vmem>>, vector<1x512xf32>
    %18 = vector.broadcast %17 : vector<1x512xf32> to vector<16x512xf32>
    %19 = arith.mulf %16, %18 : vector<16x512xf32>
    %c16_i32 = arith.constant 16 : i32
    %20 = tpu.dynamic_rotate %15 by %c16_i32 dim 1 : vector<16x512xf32>, i32 -> vector<16x512xf32>
    %c1_12 = arith.constant 1 : index
    %c0_13 = arith.constant 0 : index
    %21 = vector.load %arg6[%c1_12, %c0_13] : memref<9x512xf32, #tpu.memory_space<vmem>>, vector<1x512xf32>
    %22 = vector.broadcast %21 : vector<1x512xf32> to vector<16x512xf32>
    %23 = arith.mulf %20, %22 : vector<16x512xf32>
    %c15_i32 = arith.constant 15 : i32
    %24 = tpu.dynamic_rotate %15 by %c15_i32 dim 1 : vector<16x512xf32>, i32 -> vector<16x512xf32>
    %c2 = arith.constant 2 : index
    %c0_14 = arith.constant 0 : index
    %25 = vector.load %arg6[%c2, %c0_14] : memref<9x512xf32, #tpu.memory_space<vmem>>, vector<1x512xf32>
    %26 = vector.broadcast %25 : vector<1x512xf32> to vector<16x512xf32>
    %27 = arith.mulf %24, %26 : vector<16x512xf32>
    %c1_i32 = arith.constant 1 : i32
    %28 = tpu.dynamic_rotate %15 by %c1_i32 dim 1 : vector<16x512xf32>, i32 -> vector<16x512xf32>
    %c3 = arith.constant 3 : index
    %c0_15 = arith.constant 0 : index
    %29 = vector.load %arg6[%c3, %c0_15] : memref<9x512xf32, #tpu.memory_space<vmem>>, vector<1x512xf32>
    %30 = vector.broadcast %29 : vector<1x512xf32> to vector<16x512xf32>
    %31 = arith.mulf %28, %30 : vector<16x512xf32>
    %c4 = arith.constant 4 : index
    %c0_16 = arith.constant 0 : index
    %32 = vector.load %arg6[%c4, %c0_16] : memref<9x512xf32, #tpu.memory_space<vmem>>, vector<1x512xf32>
    %33 = vector.broadcast %32 : vector<1x512xf32> to vector<16x512xf32>
    %34 = arith.mulf %15, %33 : vector<16x512xf32>
    %c511_i32 = arith.constant 511 : i32
    %35 = tpu.dynamic_rotate %15 by %c511_i32 dim 1 : vector<16x512xf32>, i32 -> vector<16x512xf32>
    %c5 = arith.constant 5 : index
    %c0_17 = arith.constant 0 : index
    %36 = vector.load %arg6[%c5, %c0_17] : memref<9x512xf32, #tpu.memory_space<vmem>>, vector<1x512xf32>
    %37 = vector.broadcast %36 : vector<1x512xf32> to vector<16x512xf32>
    %38 = arith.mulf %35, %37 : vector<16x512xf32>
    %c497_i32 = arith.constant 497 : i32
    %39 = tpu.dynamic_rotate %15 by %c497_i32 dim 1 : vector<16x512xf32>, i32 -> vector<16x512xf32>
    %c6 = arith.constant 6 : index
    %c0_18 = arith.constant 0 : index
    %40 = vector.load %arg6[%c6, %c0_18] : memref<9x512xf32, #tpu.memory_space<vmem>>, vector<1x512xf32>
    %41 = vector.broadcast %40 : vector<1x512xf32> to vector<16x512xf32>
    %42 = arith.mulf %39, %41 : vector<16x512xf32>
    %c496_i32 = arith.constant 496 : i32
    %43 = tpu.dynamic_rotate %15 by %c496_i32 dim 1 : vector<16x512xf32>, i32 -> vector<16x512xf32>
    %c7 = arith.constant 7 : index
    %c0_19 = arith.constant 0 : index
    %44 = vector.load %arg6[%c7, %c0_19] : memref<9x512xf32, #tpu.memory_space<vmem>>, vector<1x512xf32>
    %45 = vector.broadcast %44 : vector<1x512xf32> to vector<16x512xf32>
    %46 = arith.mulf %43, %45 : vector<16x512xf32>
    %c495_i32 = arith.constant 495 : i32
    %47 = tpu.dynamic_rotate %15 by %c495_i32 dim 1 : vector<16x512xf32>, i32 -> vector<16x512xf32>
    %c8 = arith.constant 8 : index
    %c0_20 = arith.constant 0 : index
    %48 = vector.load %arg6[%c8, %c0_20] : memref<9x512xf32, #tpu.memory_space<vmem>>, vector<1x512xf32>
    %49 = vector.broadcast %48 : vector<1x512xf32> to vector<16x512xf32>
    %50 = arith.mulf %47, %49 : vector<16x512xf32>
    %51 = tpu.concatenate %19, %23, %27, %31, %34, %38, %42, %46, %50 in 0 : vector<16x512xf32>, vector<16x512xf32>, vector<16x512xf32>, vector<16x512xf32>, vector<16x512xf32>, vector<16x512xf32>, vector<16x512xf32>, vector<16x512xf32>, vector<16x512xf32> -> vector<144x512xf32>
    %c0_21 = arith.constant 0 : index
    %c0_22 = arith.constant 0 : index
    %52 = vector.load %arg5[%c0_21, %c0_22] : memref<8x144xf32, #tpu.memory_space<vmem>>, vector<8x144xf32>
    %cst_23 = arith.constant dense<0.000000e+00> : vector<8x512xf32>
    %53 = tpu.matmul %52, %51, %cst_23 {dimension_numbers = #tpu.dot_dimension_numbers<[1], [0], [0], [1], [0, 0, 1, 1], [], []>} : vector<8x144xf32>, vector<144x512xf32>, vector<8x512xf32> -> vector<8x512xf32>
    %c0_24 = arith.constant 0 : index
    %c0_25 = arith.constant 0 : index
    %54 = vector.load %arg7[%c0_24, %c0_25] : memref<8x512xf32, #tpu.memory_space<vmem>>, vector<8x512xf32>
    tpu.vector_store %arg7[%c0_24, %c0_25], %53 {strides = array<i32>} : memref<8x512xf32, #tpu.memory_space<vmem>>, vector<8x512xf32>,
    return
  }
  func.func @transform_0(%arg0: i32) -> (i32, i32) {
    %c0_i32 = arith.constant 0 : i32
    %c0_i32_0 = arith.constant 0 : i32
    return %c0_i32, %arg0 : i32, i32
  }
  func.func @transform_1(%arg0: i32) -> (i32, i32) {
    %c0_i32 = arith.constant 0 : i32
    %c0_i32_0 = arith.constant 0 : i32
    %c0_i32_1 = arith.constant 0 : i32
    return %c0_i32, %c0_i32_0 : i32, i32
  }
  func.func @transform_2(%arg0: i32) -> (i32, i32) {
    %c0_i32 = arith.constant 0 : i32
    %c0_i32_0 = arith.constant 0 : i32
    %c0_i32_1 = arith.constant 0 : i32
    return %c0_i32, %c0_i32_0 : i32, i32
  }
  func.func @transform_3(%arg0: i32) -> (i32, i32) {
    %c0_i32 = arith.constant 0 : i32
    %c0_i32_0 = arith.constant 0 : i32
    %c0_i32_1 = arith.constant 0 : i32
    return %c0_i32, %c0_i32_0 : i32, i32
  }
  func.func @transform_4(%arg0: i32) -> (i32, i32) {
    %c0_i32 = arith.constant 0 : i32
    %c0_i32_0 = arith.constant 0 : i32
    %c0_i32_1 = arith.constant 0 : i32
    return %c0_i32, %c0_i32_0 : i32, i32
  }
  func.func @transform_5(%arg0: i32) -> (i32, i32) {
    %c0_i32 = arith.constant 0 : i32
    %c0_i32_0 = arith.constant 0 : i32
    %c0_i32_1 = arith.constant 0 : i32
    return %c0_i32, %c0_i32_0 : i32, i32
  }
  func.func @transform_6(%arg0: i32) -> (i32, i32) {
    %c0_i32 = arith.constant 0 : i32
    %c0_i32_0 = arith.constant 0 : i32
    return %c0_i32, %arg0 : i32, i32
  }
}

</mosaic_0001>

<bundles_post_ra>
// kernel: tpu_custom_call.1
= control target key start
LH: loop header
LB: loop body
LE: loop exit
PB: predicated region body
PF: predicated region fallthrough
CT: control target
= control target key end

     0   :  { %11 = vsyncpa [#allocation3], 0  ;;  %s1635_s0 = inlined_call_operand.vmem [shape: f32[4,512], index: 0, kind: input, shape index: {}]   ;;  %s1636_s1 = inlined_call_operand.vmem [shape: f32[4,2], index: 1, kind: input, shape index: {}]   ;;  %s1637_s2 = inlined_call_operand.vmem [shape: f32[16,4], index: 2, kind: input, shape index: {}]   ;;  %s1638_s3 = inlined_call_operand.vmem [shape: f32[16,1], index: 3, kind: input, shape index: {}]   ;;  %s1639_s4 = inlined_call_operand.vmem [shape: f32[8,144], index: 4, kind: input, shape index: {}]   ;;  %s1640_s5 = inlined_call_operand.hbm [shape: f32[9,512], index: 5, kind: input, shape index: {}]   ;;  %s1641_s6 = inlined_call_operand.hbm [shape: f32[8,512], index: 6, kind: output, shape index: {}]  }
   0x1   :  { %12 = vsyncpa [#allocation4], 0  ;;  %s987_s21 = smov [#allocation2]  }
   0x2   :  { %s28_s22 = sshll.u32 %s987_s21, 4  ;;  %s29_s22 = int_to_ptr.vmem [resolvable:$true] %s28_s22 }
   0x3   :  { %s951_s23 = scalar_lea.vmem %s29_s22, 1024  ;;  %p956_p1 = scmp.lt.s32.totalorder %s29_s22, %s29_s22 }
   0x4   :  { %p952_p0 = scmp.ne.s32.totalorder %s29_s22, %s951_s23  ;;  %p957_p2 = scmp.lt.s32.totalorder %s951_s23, %s951_s23 }
   0x6   :  { %p958_p3 = por %p957_p2, %p956_p1 }
   0x8   :  { %p959_p4 = pnand %p958_p3, %p952_p0 }
   0xa   :  { %962 = shalt.err (!%p959_p4)
}
   0xb   :  { %s988_s24 = smov 512   ;;  %s989_s25 = smov 32  }
   0xc   :  { %34 = dma.hbm_to_vmem [thread:$0]  %s1640_s5, 1024, %s29_s22, [#allocation3], %s988_s24, %s988_s24, %s989_s25  }
   0xd   :  { %983 = dma.done.wait [#allocation3], 1024  }
   0xe   :  { %984 = vsyncadd [#allocation3], 4294966272  ;;  %v990_v0 = vmov 0   ;;  %v40_v1 = vld [vmem:[%s1636_s1] sm:$0xf]  ;;  %v991_v2 = vmov 1   ;;  %v48_v8 = vlaneseq }
   0xf   :  { %939 = vset.pattern.permute.xlu0 %v990_v0  ;;  %941 = vset.pattern.permute.xlu1 %v990_v0  ;;  %v992_v3 = vmov 0.0   ;;  %v73_v4 = vld [vmem:[%s1638_s3 + $0x8] sm:$0xff]  ;;  %v72_v5 = vld [vmem:[%s1638_s3] sm:$0xff]  ;;  %v993_v6 = vmov 839922192   ;;  %vm95_vm0 = vcmask 1043456  }
  0x10   :  { %43 = vperm.xlu0 %939, %v40_v1   ;;  %168 = vmatprep.mubr.f32.mxu0 %v992_v3  ;;  %v46_v7 = vunpack.c.l.s4 %v993_v6  ;;  %v1051_v10 = vshrl.u32 %v48_v8, 7  ;;  %v38_v14 = vld [vmem:[%s1635_s0] sm:$0xff]  ;;  %v39_v15 = vld [vmem:[%s1635_s0 + $0x8] sm:$0xff]  ;;  %vm88_vm1 = vcmask 31744   ;;  %s995_s14 = smov 113   ;;  %s996_s15 = smov 127  }
  0x11   :  { %245 = vmatprep.mubr.f32.mxu1 %v992_v3  ;;  %81 = vperm.xlu1 %941, %v73_v4   ;;  %v70_v26 = vld [vmem:[%s1637_s2] sm:$0xff]  ;;  %v71_v27 = vld [vmem:[%s1637_s2 + $0x8] sm:$0xff]  ;;  %s994_s2 = smov 112   ;;  %s997_s16 = smov 1   ;;  %v1201_v61 = vand.u32 127, %v48_v8  ;;  %vm748_vm3 = vcmask 130048  }
  0x12   :  { %v47_v9 = vunpack.c.0.s8 %v46_v7  ;;  %v1069_v29 = vsub.s32 0, %v1051_v10  ;;  %v1071_v31 = vld [vmem:[#allocation2 + $0x4] ss:$8 sm:$0xf]  ;;  %v1074_v32 = vsub.s32 1, %v1051_v10  ;;  %s998_s17 = smov 15  }
  0x13   :  { %s999_s18 = smov 16   ;;  %s1000_s19 = smov 17   ;;  %v660_v62 = vld [vmem:[#allocation2 + $0x7] ss:$8 sm:$0xf]  ;;  %vm650_vm2 = vcmp.lt.s32.totalorder %v1201_v61, 112 }
  0x14   :  { %940 = vset.pattern.permute.xlu0 %v991_v2  ;;  %v50_v11 = vsub.s32 %v47_v9, %v1051_v10  ;;  %1655 = vst [vmem:[#allocation8_spill] sm:$0xff] %v1074_v32  ;;  %v1078_v38 = vrot.slane %v1071_v31, %v1069_v29  ;;  %v1082_v42 = vrot.slane %v1071_v31, %v1074_v32  ;;  %s1001_s20 = smov 111   ;;  %v1217_v2 = vsub.s32 2, %v1051_v10  ;;  %s1002_s25 = smov [#allocation5]  }
  0x15   :  { %56 = vperm.xlu0 %940, %v40_v1   ;;  %76 = vperm.xlu1 %941, %v72_v5   ;;  %v747_v1 = vld [vmem:[%s1639_s4 + $0x8] sm:$0xff]  ;;  %v1225_v5 = vrot.slane %v660_v62, %v1074_v32  ;;  %vm594_vm4 = vcmp.lt.s32.totalorder %v1201_v61, 113  ;;  %vm538_vm5 = vcmp.lt.s32.totalorder %v1201_v61, 127  ;;  %vm451_vm6 = vcmp.lt.s32.totalorder %v1201_v61, 1  ;;  %s904_s26 = sshll.u32 %s1002_s25, 4  ;;  %s905_s26 = int_to_ptr.vmem [resolvable:$true] %s904_s26 }
  0x16   :  { %v1235_v9 = vrot.slane %v660_v62, %v1217_v2  ;;  %vm395_vm7 = vcmp.lt.s32.totalorder %v1201_v61, 15  ;;  %vm339_vm8 = vcmp.lt.s32.totalorder %v1201_v61, 16  ;;  %vm284_vm9 = vcmp.lt.s32.totalorder %v1201_v61, 17  ;;  %p968_p6 = scmp.lt.s32.totalorder %s905_s26, %s905_s26 }
  0x17   :  { %vm706_vm10 = vcmp.lt.s32.totalorder %v1201_v61, 111 }
  0x19   :  { %942 = vset.pattern.permute.xlu0 %v990_v0  ;;  %v1211_v0 = vrot.slane %v660_v62, %v1069_v29 }
  0x8b   :  { %v44_v12 = vpop.permute.xlu0 %43 }
  0x8c   :  { %v51_v13 = vrot.slane %v44_v12, %v50_v11  ;;  %v1066_v28 = vpop.permute.xlu1 %81  ;;  %v604_v12 = vld [vmem:[#allocation2 + $0x6] ss:$8 sm:$0xf] }
  0x8e   :  { %v53_v17 = vmul.f32 %v51_v13, %v38_v14  ;;  %v54_v18 = vmul.f32 %v51_v13, %v39_v15 }
  0x90   :  { %v57_v16 = vpop.permute.xlu0 %56  ;;  %v77_v30 = vpop.permute.xlu1 %76 }
  0x91   :  { %v64_v19 = vrot.slane %v57_v16, %v50_v11 }
  0x93   :  { %v66_v20 = vadd.f32 %v64_v19, %v53_v17  ;;  %v67_v21 = vadd.f32 %v64_v19, %v54_v18 }
  0x95   :  { %v68_v22 = vmax.f32 %v66_v20, 0.0  ;;  %v69_v23 = vmax.f32 %v67_v21, 0.0  ;;  %v1261_v20 = vrot.slane %v604_v12, %v1069_v29 }
  0x97   :  { %v86_v24 = vcombine.high %v68_v22, %v68_v22  ;;  %v87_v25 = vcombine.high %v69_v23, %v69_v23 }
  0x99   :  { %913 = vmatprep.subr.msk.mxu0 %vm95_vm0, %v86_v24  ;;  %917 = vmatprep.subr.msk.mxu1 %vm95_vm0, %v87_v25 }
  0x9a   :  { %914 = vmatpush1.msk.msra.mxu0 %vm95_vm0, %v68_v22  ;;  %918 = vmatpush1.msk.msra.mxu1 %vm95_vm0, %v69_v23  ;;  %v1266_v22 = vrot.slane %v604_v12, %v1074_v32 }
  0x9b   :  { %915 = vmatmul.mubr.msk.f32.vlgmr.msra.gmra.mxu0 %vm88_vm1, %v70_v26  ;;  %919 = vmatmul.mubr.msk.f32.vlgmr.msra.gmra.mxu1 %vm88_vm1, %v70_v26  ;;  %v1276_v26 = vrot.slane %v604_v12, %v1217_v2 }
  0x9c   :  { %174 = vmatprep.mubr.f32.mxu0 %v992_v3  ;;  %251 = vmatprep.mubr.f32.mxu1 %v992_v3  ;;  %v1220_v3 = vsub.s32 3, %v1051_v10 }
  0x9e   :  { %v1238_v10 = vrot.slane %v660_v62, %v1220_v3 }
  0x9f   :  { %916 = vmatmul.mubr.msk.f32.gmra.mxu0 %vm88_vm1, %v71_v27  ;;  %920 = vmatmul.mubr.msk.f32.gmra.mxu1 %vm88_vm1, %v71_v27  ;;  %v1279_v27 = vrot.slane %v604_v12, %v1220_v3 }
  0xa0   :  { %921 = vmatprep.mubr.msk.f32.mxu0 %vm748_vm3, %v747_v1  ;;  %922 = vmatprep.mubr.msk.f32.mxu1 %vm748_vm3, %v747_v1 }
 0x15b   :  { %v170_v33 = vpop.f32.mrf.mxu0  ;;  %v247_v34 = vpop.f32.mrf.mxu1 }
 0x15c   :  { %v171_v35 = vadd.f32 %v170_v33, %v77_v30  ;;  %v248_v40 = vadd.f32 %v247_v34, %v77_v30 }
 0x15d   :  { %v172_v36 = vpop.f32.mrf.mxu0  ;;  %v249_v37 = vpop.f32.mrf.mxu1 }
 0x15e   :  { %v258_v39 = vmax.f32 %v171_v35, 0.0  ;;  %v173_v41 = vadd.f32 %v172_v36, %v77_v30  ;;  %v250_v44 = vadd.f32 %v249_v37, %v77_v30  ;;  %v1088_v46 = vmax.f32 %v248_v40, 0.0  ;;  %v548_v30 = vld [vmem:[#allocation2 + $0x5] ss:$8 sm:$0xf] }
 0x15f   :  { %v176_v49 = vpop.f32.mrf.mxu0  ;;  %v253_v50 = vpop.f32.mrf.mxu1 }
 0x160   :  { %v259_v43 = vmax.f32 %v173_v41, 0.0  ;;  %634 = vrot.lane.b32.xlu1 %v258_v39, %s994_s2  ;;  %v1086_v45 = vmul.f32 %v1078_v38, %v258_v39  ;;  %v1094_v48 = vmax.f32 %v250_v44, 0.0  ;;  %v177_v52 = vadd.f32 %v176_v49, %v1066_v28 }
 0x161   :  { %v178_v51 = vpop.f32.mrf.mxu0  ;;  %v255_v54 = vpop.f32.mrf.mxu1  ;;  %v254_v56 = vadd.f32 %v253_v50, %v1066_v28  ;;  %v1298_v41 = vrot.slane %v548_v30, %v1069_v29  ;;  %v1301_v44 = vrot.slane %v548_v30, %v1074_v32 }
 0x162   :  { %638 = vrot.lane.b32.xlu0 %v259_v43, %s994_s2  ;;  %v1092_v47 = vmul.f32 %v1082_v42, %v259_v43  ;;  %v179_v53 = vadd.f32 %v178_v51, %v1066_v28  ;;  %v1139_v55 = vmax.f32 %v177_v52, 0.0  ;;  %v256_v58 = vadd.f32 %v255_v54, %v1066_v28 }
 0x163   :  { %v1148_v59 = vmax.f32 %v254_v56, 0.0  ;;  %v1309_v52 = vrot.slane %v548_v30, %v1217_v2  ;;  %v461_v56 = vld [vmem:[#allocation2 + $0x3] ss:$8 sm:$0xf] }
 0x164   :  { %642 = vrot.lane.b32.xlu1 %v1088_v46, %s994_s2  ;;  %v1143_v57 = vmax.f32 %v179_v53, 0.0  ;;  %v1152_v60 = vmax.f32 %v256_v58, 0.0  ;;  %v1312_v53 = vrot.slane %v548_v30, %v1220_v3 }
 0x166   :  { %646 = vrot.lane.b32.xlu0 %v1094_v48, %s994_s2 }
 0x168   :  { %578 = vrot.lane.b32.xlu1 %v258_v39, %s995_s14 }
 0x16a   :  { %582 = vrot.lane.b32.xlu0 %v259_v43, %s995_s14 }
 0x16c   :  { %586 = vrot.lane.b32.xlu1 %v1088_v46, %s995_s14 }
 0x16e   :  { %590 = vrot.lane.b32.xlu0 %v1094_v48, %s995_s14 }
 0x170   :  { %522 = vrot.lane.b32.xlu1 %v258_v39, %s996_s15 }
 0x172   :  { %526 = vrot.lane.b32.xlu0 %v259_v43, %s996_s15 }
 0x174   :  { %530 = vrot.lane.b32.xlu1 %v1088_v46, %s996_s15 }
 0x176   :  { %534 = vrot.lane.b32.xlu0 %v1094_v48, %s996_s15 }
 0x178   :  { %435 = vrot.lane.b32.xlu1 %v258_v39, %s997_s16 }
 0x17a   :  { %439 = vrot.lane.b32.xlu0 %v259_v43, %s997_s16 }
 0x17c   :  { %443 = vrot.lane.b32.xlu1 %v1088_v46, %s997_s16 }
 0x17e   :  { %447 = vrot.lane.b32.xlu0 %v1094_v48, %s997_s16 }
 0x180   :  { %379 = vrot.lane.b32.xlu1 %v258_v39, %s998_s17 }
 0x182   :  { %383 = vrot.lane.b32.xlu0 %v259_v43, %s998_s17 }
 0x184   :  { %387 = vrot.lane.b32.xlu1 %v1088_v46, %s998_s17 }
 0x186   :  { %391 = vrot.lane.b32.xlu0 %v1094_v48, %s998_s17 }
 0x188   :  { %323 = vrot.lane.b32.xlu1 %v258_v39, %s999_s18 }
 0x18a   :  { %327 = vrot.lane.b32.xlu0 %v259_v43, %s999_s18 }
 0x18c   :  { %331 = vrot.lane.b32.xlu1 %v1088_v46, %s999_s18 }
 0x18e   :  { %335 = vrot.lane.b32.xlu0 %v1094_v48, %s999_s18 }
 0x190   :  { %266 = vrot.lane.b32.xlu1 %v258_v39, %s1000_s19 }
 0x192   :  { %270 = vrot.lane.b32.xlu0 %v259_v43, %s1000_s19 }
 0x194   :  { %274 = vrot.lane.b32.xlu1 %v1088_v46, %s1000_s19 }
 0x196   :  { %278 = vrot.lane.b32.xlu0 %v1094_v48, %s1000_s19 }
 0x198   :  { %690 = vrot.lane.b32.xlu1 %v258_v39, %s1001_s20 }
 0x19a   :  { %694 = vrot.lane.b32.xlu0 %v259_v43, %s1001_s20 }
 0x19c   :  { %636 = vrot.lane.b32.xlu1 %v1139_v55, %s994_s2 }
 0x19e   :  { %640 = vrot.lane.b32.xlu0 %v1143_v57, %s994_s2 }
 0x1a0   :  { %644 = vrot.lane.b32.xlu1 %v1148_v59, %s994_s2 }
 0x1a2   :  { %648 = vrot.lane.b32.xlu0 %v1152_v60, %s994_s2 }
 0x1a4   :  { %580 = vrot.lane.b32.xlu1 %v1139_v55, %s995_s14 }
 0x1a6   :  { %584 = vrot.lane.b32.xlu0 %v1143_v57, %s995_s14 }
 0x1a8   :  { %588 = vrot.lane.b32.xlu1 %v1148_v59, %s995_s14 }
 0x1aa   :  { %592 = vrot.lane.b32.xlu0 %v1152_v60, %s995_s14 }
 0x1ac   :  { %524 = vrot.lane.b32.xlu1 %v1139_v55, %s996_s15 }
 0x1ae   :  { %528 = vrot.lane.b32.xlu0 %v1143_v57, %s996_s15 }
 0x1b0   :  { %532 = vrot.lane.b32.xlu1 %v1148_v59, %s996_s15 }
 0x1b2   :  { %536 = vrot.lane.b32.xlu0 %v1152_v60, %s996_s15 }
 0x1b4   :  { %437 = vrot.lane.b32.xlu1 %v1139_v55, %s997_s16 }
 0x1b6   :  { %441 = vrot.lane.b32.xlu0 %v1143_v57, %s997_s16 }
 0x1b8   :  { %445 = vrot.lane.b32.xlu1 %v1148_v59, %s997_s16 }
 0x1ba   :  { %449 = vrot.lane.b32.xlu0 %v1152_v60, %s997_s16 }
 0x1bc   :  { %381 = vrot.lane.b32.xlu1 %v1139_v55, %s998_s17 }
 0x1be   :  { %385 = vrot.lane.b32.xlu0 %v1143_v57, %s998_s17 }
 0x1c0   :  { %389 = vrot.lane.b32.xlu1 %v1148_v59, %s998_s17 }
 0x1c2   :  { %393 = vrot.lane.b32.xlu0 %v1152_v60, %s998_s17 }
 0x1c4   :  { %325 = vrot.lane.b32.xlu1 %v1139_v55, %s999_s18 }
 0x1c6   :  { %329 = vrot.lane.b32.xlu0 %v1143_v57, %s999_s18 }
 0x1c8   :  { %333 = vrot.lane.b32.xlu1 %v1148_v59, %s999_s18 }
 0x1ca   :  { %337 = vrot.lane.b32.xlu0 %v1152_v60, %s999_s18 }
 0x1cc   :  { %268 = vrot.lane.b32.xlu1 %v1139_v55, %s1000_s19 }
 0x1ce   :  { %272 = vrot.lane.b32.xlu0 %v1143_v57, %s1000_s19 }
 0x1d0   :  { %276 = vrot.lane.b32.xlu1 %v1148_v59, %s1000_s19 }
 0x1d2   :  { %280 = vrot.lane.b32.xlu0 %v1152_v60, %s1000_s19  ;;  %v635_v63 = vpop.permute.xlu1 %634 }
 0x1d4   :  { %v639_v4 = vpop.permute.xlu0 %638  ;;  %692 = vrot.lane.b32.xlu1 %v1139_v55, %s1001_s20 }
 0x1d5   :  { %v655_v6 = vsel %vm650_vm2, %v635_v63, %v639_v4 }
 0x1d6   :  { %v1230_v7 = vmul.f32 %v1211_v0, %v655_v6  ;;  %696 = vrot.lane.b32.xlu0 %v1143_v57, %s1001_s20  ;;  %v643_v8 = vpop.permute.xlu1 %642 }
 0x1d7   :  { %v653_v11 = vsel %vm650_vm2, %v639_v4, %v643_v8 }
 0x1d8   :  { %v1243_v13 = vmul.f32 %v1225_v5, %v653_v11  ;;  %v647_v14 = vpop.permute.xlu0 %646  ;;  %700 = vrot.lane.b32.xlu1 %v1148_v59, %s1001_s20  ;;  %v1331_v11 = vrot.slane %v461_v56, %v1074_v32 }
 0x1d9   :  { %v651_v15 = vsel %vm650_vm2, %v643_v8, %v647_v14  ;;  %v657_v16 = vsel %vm650_vm2, %v647_v14, %v635_v63  ;;  %v1334_v14 = vrot.slane %v461_v56, %v1217_v2 }
 0x1da   :  { %v1252_v17 = vmul.f32 %v1235_v9, %v651_v15  ;;  %v1255_v18 = vmul.f32 %v1238_v10, %v657_v16  ;;  %704 = vrot.lane.b32.xlu0 %v1152_v60, %s1001_s20  ;;  %v579_v19 = vpop.permute.xlu1 %578 }
 0x1dc   :  { %v583_v21 = vpop.permute.xlu0 %582  ;;  %698 = vrot.lane.b32.xlu1 %v1088_v46, %s1001_s20 }
 0x1dd   :  { %v599_v23 = vsel %vm594_vm4, %v579_v19, %v583_v21 }
 0x1de   :  { %v1271_v24 = vmul.f32 %v1261_v20, %v599_v23  ;;  %702 = vrot.lane.b32.xlu0 %v1094_v48, %s1001_s20  ;;  %v587_v25 = vpop.permute.xlu1 %586  ;;  %v1345_v23 = vrot.slane %v461_v56, %v1220_v3 }
 0x1df   :  { %v597_v28 = vsel %vm594_vm4, %v583_v21, %v587_v25  ;;  %v1342_v21 = vrot.slane %v461_v56, %v1069_v29 }
 0x1e0   :  { %v1284_v33 = vmul.f32 %v1266_v22, %v597_v28  ;;  %v591_v34 = vpop.permute.xlu0 %590  ;;  %v405_v28 = vld [vmem:[#allocation2 + $0x2] ss:$8 sm:$0xf] }
 0x1e1   :  { %v595_v35 = vsel %vm594_vm4, %v587_v25, %v591_v34  ;;  %v601_v36 = vsel %vm594_vm4, %v591_v34, %v579_v19  ;;  %v1367_v56 = vrot.slane %v405_v28, %v1217_v2 }
 0x1e2   :  { %v1291_v37 = vmul.f32 %v1276_v26, %v595_v35  ;;  %v1294_v39 = vmul.f32 %v1279_v27, %v601_v36  ;;  %v523_v40 = vpop.permute.xlu1 %522 }
 0x1e3   :  { %1656 = vst [vmem:[#allocation9_spill] sm:$0xff] %v1367_v56 }
 0x1e4   :  { %v527_v43 = vpop.permute.xlu0 %526 }
 0x1e5   :  { %v543_v49 = vsel %vm538_vm5, %v523_v40, %v527_v43 }
 0x1e6   :  { %v1306_v50 = vmul.f32 %v1298_v41, %v543_v49  ;;  %v531_v51 = vpop.permute.xlu1 %530 }
 0x1e7   :  { %v541_v54 = vsel %vm538_vm5, %v527_v43, %v531_v51 }
 0x1e8   :  { %v1317_v58 = vmul.f32 %v1301_v44, %v541_v54  ;;  %v535_v62 = vpop.permute.xlu0 %534 }
 0x1e9   :  { %v539_v63 = vsel %vm538_vm5, %v531_v51, %v535_v62  ;;  %v545_v1 = vsel %vm538_vm5, %v535_v62, %v523_v40  ;;  %v1364_v51 = vrot.slane %v405_v28, %v1074_v32 }
 0x1ea   :  { %v1324_v4 = vmul.f32 %v1309_v52, %v539_v63  ;;  %v1327_v6 = vmul.f32 %v1312_v53, %v545_v1  ;;  %v436_v8 = vpop.permute.xlu1 %435 }
 0x1ec   :  { %v440_v12 = vpop.permute.xlu0 %439 }
 0x1ed   :  { %v456_v15 = vsel %vm451_vm6, %v436_v8, %v440_v12 }
 0x1ee   :  { %v1339_v16 = vmul.f32 %v1331_v11, %v456_v15  ;;  %v444_v19 = vpop.permute.xlu1 %443 }
 0x1ef   :  { %v454_v25 = vsel %vm451_vm6, %v440_v12, %v444_v19  ;;  %v1378_v12 = vrot.slane %v405_v28, %v1220_v3 }
 0x1f0   :  { %v1350_v30 = vmul.f32 %v1334_v14, %v454_v25  ;;  %v448_v34 = vpop.permute.xlu0 %447 }
 0x1f1   :  { %v452_v35 = vsel %vm451_vm6, %v444_v19, %v448_v34  ;;  %v458_v36 = vsel %vm451_vm6, %v448_v34, %v436_v8  ;;  %v1375_v8 = vrot.slane %v405_v28, %v1069_v29  ;;  %1659 = vst [vmem:[#allocation12_spill] sm:$0xff] %v1378_v12  ;;  %v349_v19 = vld [vmem:[#allocation2 + $0x1] ss:$8 sm:$0xf] }
 0x1f2   :  { %v1357_v40 = vmul.f32 %v1342_v21, %v458_v36  ;;  %v1360_v43 = vmul.f32 %v1345_v23, %v452_v35  ;;  %v380_v49 = vpop.permute.xlu1 %379 }
 0x1f3   :  { %1658 = vst [vmem:[#allocation11_spill] sm:$0xff] %v1375_v8 }
 0x1f4   :  { %v384_v54 = vpop.permute.xlu0 %383 }
 0x1f5   :  { %v400_v62 = vsel %vm395_vm7, %v380_v49, %v384_v54 }
 0x1f6   :  { %v1372_v63 = vmul.f32 %v1364_v51, %v400_v62  ;;  %v388_v1 = vpop.permute.xlu1 %387 }
 0x1f7   :  { %v398_v15 = vsel %vm395_vm7, %v384_v54, %v388_v1  ;;  %v1397_v54 = vrot.slane %v349_v19, %v1074_v32 }
 0x1f8   :  { %1657 = vst [vmem:[#allocation10_spill] sm:$0xff] %v1372_v63  ;;  %v1383_v25 = vmul.f32 %v1367_v56, %v398_v15  ;;  %v392_v34 = vpop.permute.xlu0 %391 }
 0x1f9   :  { %v396_v35 = vsel %vm395_vm7, %v388_v1, %v392_v34  ;;  %v402_v36 = vsel %vm395_vm7, %v392_v34, %v380_v49  ;;  %1663 = vst [vmem:[#allocation16_spill] sm:$0xff] %v1397_v54 }
 0x1fa   :  { %1660 = vst [vmem:[#allocation13_spill] sm:$0xff] %v1383_v25  ;;  %v1390_v62 = vmul.f32 %v1375_v8, %v402_v36  ;;  %v1393_v28 = vmul.f32 %v1378_v12, %v396_v35  ;;  %v324_v63 = vpop.permute.xlu1 %323  ;;  %v1400_v25 = vrot.slane %v349_v19, %v1217_v2  ;;  %v1408_v35 = vrot.slane %v349_v19, %v1069_v29 }
 0x1fb   :  { %v1411_v36 = vrot.slane %v349_v19, %v1220_v3 }
 0x1fc   :  { %1661 = vst [vmem:[#allocation14_spill] sm:$0xff] %v1390_v62  ;;  %1662 = vst [vmem:[#allocation15_spill] sm:$0xff] %v1393_v28  ;;  %v328_v15 = vpop.permute.xlu0 %327  ;;  %v293_v28 = vld [vmem:[#allocation2] ss:$8 sm:$0xf] }
 0x1fd   :  { %v344_v1 = vsel %vm339_vm8, %v324_v63, %v328_v15  ;;  %1665 = vst [vmem:[#allocation18_spill] sm:$0xff] %v1408_v35  ;;  %1666 = vst [vmem:[#allocation19_spill] sm:$0xff] %v1411_v36 }
 0x1fe   :  { %v1405_v49 = vmul.f32 %v1397_v54, %v344_v1  ;;  %v332_v34 = vpop.permute.xlu1 %331 }
 0x1ff   :  { %v342_v62 = vsel %vm339_vm8, %v328_v15, %v332_v34  ;;  %v1430_v15 = vrot.slane %v293_v28, %v1074_v32 }
 0x200   :  { %1664 = vst [vmem:[#allocation17_spill] sm:$0xff] %v1405_v49  ;;  %v1416_v12 = vmul.f32 %v1400_v25, %v342_v62  ;;  %v336_v8 = vpop.permute.xlu0 %335 }
 0x201   :  { %v340_v56 = vsel %vm339_vm8, %v332_v34, %v336_v8  ;;  %v346_v1 = vsel %vm339_vm8, %v336_v8, %v324_v63  ;;  %1670 = vst [vmem:[#allocation23_spill] sm:$0xff] %v1430_v15 }
 0x202   :  { %1667 = vst [vmem:[#allocation20_spill] sm:$0xff] %v1416_v12  ;;  %v1423_v49 = vmul.f32 %v1408_v35, %v346_v1  ;;  %v1426_v19 = vmul.f32 %v1411_v36, %v340_v56  ;;  %v267_v54 = vpop.permute.xlu1 %266  ;;  %v1433_v12 = vrot.slane %v293_v28, %v1217_v2  ;;  %v1441_v56 = vrot.slane %v293_v28, %v1069_v29 }
 0x203   :  { %v1444_v1 = vrot.slane %v293_v28, %v1220_v3 }
 0x204   :  { %1668 = vst [vmem:[#allocation21_spill] sm:$0xff] %v1423_v49  ;;  %1669 = vst [vmem:[#allocation22_spill] sm:$0xff] %v1426_v19  ;;  %v271_v62 = vpop.permute.xlu0 %270  ;;  %v1448_v49 = vld [vmem:[#allocation2 + $0x20] ss:$8 sm:$0xf] }
 0x205   :  { %v289_v34 = vsel %vm284_vm9, %v267_v54, %v271_v62  ;;  %1672 = vst [vmem:[#allocation25_spill] sm:$0xff] %v1448_v49 }
 0x206   :  { %v1438_v63 = vmul.f32 %v1430_v15, %v289_v34  ;;  %v275_v8 = vpop.permute.xlu1 %274 }
 0x207   :  { %v287_v32 = vsel %vm284_vm9, %v271_v62, %v275_v8 }
 0x208   :  { %1671 = vst [vmem:[#allocation24_spill] sm:$0xff] %v1438_v63  ;;  %v1451_v19 = vmul.f32 %v1433_v12, %v287_v32  ;;  %v279_v36 = vpop.permute.xlu0 %278  ;;  %v1468_v32 = vrot.slane %v1448_v49, %v1069_v29 }
 0x209   :  { %v285_v34 = vsel %vm284_vm9, %v275_v8, %v279_v36  ;;  %v291_v63 = vsel %vm284_vm9, %v279_v36, %v267_v54 }
 0x20a   :  { %1673 = vst [vmem:[#allocation26_spill] sm:$0xff] %v1451_v19  ;;  %v1458_v15 = vmul.f32 %v1441_v56, %v291_v63  ;;  %v1461_v28 = vmul.f32 %v1444_v1, %v285_v34  ;;  %v1463_v35 = vpop.permute.xlu1 %690  ;;  %1677 = vst [vmem:[#allocation30_spill] sm:$0xff] %v1468_v32 }
 0x20b   :  { %1676 = vst [vmem:[#allocation29_spill] sm:$0xff] %v1463_v35 }
 0x20c   :  { %1674 = vst [vmem:[#allocation27_spill] sm:$0xff] %v1458_v15  ;;  %1675 = vst [vmem:[#allocation28_spill] sm:$0xff] %v1461_v28  ;;  %v1470_v62 = vpop.permute.xlu0 %694 }
 0x20d   :  { %1678 = vst [vmem:[#allocation31_spill] sm:$0xff] %v1470_v62  ;;  %v711_v54 = vsel %vm706_vm10, %v1463_v35, %v1470_v62 }
 0x20e   :  { %v1477_v36 = vmul.f32 %v1468_v32, %v711_v54  ;;  %v637_v63 = vpop.permute.xlu1 %636 }
 0x210   :  { %1679 = vst [vmem:[#allocation32_spill] sm:$0xff] %v1477_v36  ;;  %v641_v8 = vpop.permute.xlu0 %640 }
 0x211   :  { %v656_v34 = vsel %vm650_vm2, %v637_v63, %v641_v8 }
 0x212   :  { %v686_v19 = vmul.f32 %v1211_v0, %v656_v34  ;;  %v645_v15 = vpop.permute.xlu1 %644 }
 0x213   :  { %v654_v29 = vsel %vm650_vm2, %v641_v8, %v645_v15 }
 0x214   :  { %v687_v28 = vmul.f32 %v1225_v5, %v654_v29  ;;  %v649_v49 = vpop.permute.xlu0 %648 }
 0x215   :  { %v652_v35 = vsel %vm650_vm2, %v645_v15, %v649_v49  ;;  %v658_v54 = vsel %vm650_vm2, %v649_v49, %v637_v63 }
 0x216   :  { %v688_v36 = vmul.f32 %v1235_v9, %v652_v35  ;;  %v689_v62 = vmul.f32 %v1238_v10, %v658_v54  ;;  %752 = vmatprep.subr.mxu0 %v687_v28  ;;  %v581_v32 = vpop.permute.xlu1 %580 }
 0x217   :  { %753 = vmatpush1.msra.mxu0 %v686_v19 }
 0x218   :  { %v585_v0 = vpop.permute.xlu0 %584  ;;  %754 = vmatprep.subr.mxu0 %v1243_v13  ;;  %823 = vmatprep.subr.mxu1 %v689_v62 }
 0x219   :  { %v600_v5 = vsel %vm594_vm4, %v581_v32, %v585_v0  ;;  %755 = vmatpush1.msra.mxu0 %v1230_v7  ;;  %824 = vmatpush1.msra.mxu1 %v688_v36 }
 0x21a   :  { %v630_v15 = vmul.f32 %v1261_v20, %v600_v5  ;;  %825 = vmatprep.subr.mxu1 %v1255_v18  ;;  %v589_v9 = vpop.permute.xlu1 %588  ;;  %v1682_v5 = vld [vmem:[#allocation12_spill] sm:$0xff] }
 0x21b   :  { %v598_v10 = vsel %vm594_vm4, %v585_v0, %v589_v9  ;;  %826 = vmatpush1.msra.mxu1 %v1252_v17  ;;  %v1681_v0 = vld [vmem:[#allocation11_spill] sm:$0xff] }
 0x21c   :  { %v631_v49 = vmul.f32 %v1266_v22, %v598_v10  ;;  %v593_v13 = vpop.permute.xlu0 %592  ;;  %v1683_v10 = vld [vmem:[#allocation10_spill] sm:$0xff] }
 0x21d   :  { %v596_v35 = vsel %vm594_vm4, %v589_v9, %v593_v13  ;;  %v602_v7 = vsel %vm594_vm4, %v593_v13, %v581_v32 }
 0x21e   :  { %v632_v19 = vmul.f32 %v1276_v26, %v596_v35  ;;  %v633_v20 = vmul.f32 %v1279_v27, %v602_v7  ;;  %756 = vmatprep.subr.mxu0 %v631_v49  ;;  %v525_v18 = vpop.permute.xlu1 %524  ;;  %v1684_v49 = vld [vmem:[#allocation16_spill] sm:$0xff]  ;;  %v1685_v35 = vld [vmem:[#allocation15_spill] sm:$0xff] }
 0x21f   :  { %757 = vmatpush1.msra.mxu0 %v630_v15 }
 0x220   :  { %v529_v28 = vpop.permute.xlu0 %528  ;;  %758 = vmatprep.subr.mxu0 %v1284_v33  ;;  %827 = vmatprep.subr.mxu1 %v633_v20 }
 0x221   :  { %v544_v17 = vsel %vm538_vm5, %v525_v18, %v529_v28  ;;  %759 = vmatpush1.msra.mxu0 %v1271_v24  ;;  %828 = vmatpush1.msra.mxu1 %v632_v19  ;;  %v1686_v19 = vld [vmem:[#allocation14_spill] sm:$0xff] }
 0x222   :  { %v574_v22 = vmul.f32 %v1298_v41, %v544_v17  ;;  %829 = vmatprep.subr.mxu1 %v1294_v39  ;;  %v533_v26 = vpop.permute.xlu1 %532 }
 0x223   :  { %v542_v27 = vsel %vm538_vm5, %v529_v28, %v533_v26  ;;  %830 = vmatpush1.msra.mxu1 %v1291_v37  ;;  %v519_v37 = vmul.f32 %v1082_v42, %v1143_v57 }
 0x224   :  { %v575_v32 = vmul.f32 %v1301_v44, %v542_v27  ;;  %v537_v33 = vpop.permute.xlu0 %536  ;;  %v509_v44 = vrot.slane %v1071_v31, %v1220_v3  ;;  %v1688_v27 = vld [vmem:[#allocation18_spill] sm:$0xff] }
 0x225   :  { %v540_v62 = vsel %vm538_vm5, %v533_v26, %v537_v33  ;;  %v546_v24 = vsel %vm538_vm5, %v537_v33, %v525_v18  ;;  %v1687_v18 = vld [vmem:[#allocation13_spill] sm:$0xff]  ;;  %v1689_v33 = vld [vmem:[#allocation19_spill] sm:$0xff] }
 0x226   :  { %v576_v36 = vmul.f32 %v1309_v52, %v540_v62  ;;  %v577_v41 = vmul.f32 %v1312_v53, %v546_v24  ;;  %760 = vmatprep.subr.mxu0 %v575_v32  ;;  %v438_v39 = vpop.permute.xlu1 %437  ;;  %v518_v52 = vmul.f32 %v1078_v38, %v1139_v55  ;;  %v505_v53 = vrot.slane %v1071_v31, %v1217_v2 }
 0x227   :  { %761 = vmatpush1.msra.mxu0 %v574_v22  ;;  %v521_v57 = vmul.f32 %v509_v44, %v1152_v60  ;;  %v517_v31 = vmul.f32 %v509_v44, %v1094_v48 }
 0x228   :  { %v442_v63 = vpop.permute.xlu0 %441  ;;  %762 = vmatprep.subr.mxu0 %v1317_v58  ;;  %831 = vmatprep.subr.mxu1 %v577_v41 }
 0x229   :  { %v457_v8 = vsel %vm451_vm6, %v438_v39, %v442_v63  ;;  %763 = vmatpush1.msra.mxu0 %v1306_v50  ;;  %832 = vmatpush1.msra.mxu1 %v576_v36  ;;  %v520_v50 = vmul.f32 %v505_v53, %v1148_v59 }
 0x22a   :  { %v488_v58 = vmul.f32 %v1331_v11, %v457_v8  ;;  %764 = vmatprep.subr.mxu0 %v519_v37  ;;  %833 = vmatprep.subr.mxu1 %v1327_v6  ;;  %v446_v42 = vpop.permute.xlu1 %445  ;;  %v1692_v37 = vld [vmem:[#allocation22_spill] sm:$0xff]  ;;  %v1693_v8 = vld [vmem:[#allocation21_spill] sm:$0xff] }
 0x22b   :  { %v455_v34 = vsel %vm451_vm6, %v442_v63, %v446_v42  ;;  %765 = vmatpush1.msra.mxu0 %v518_v52  ;;  %834 = vmatpush1.msra.mxu1 %v1324_v4  ;;  %v516_v4 = vmul.f32 %v505_v53, %v1088_v46  ;;  %v1694_v53 = vld [vmem:[#allocation20_spill] sm:$0xff] }
 0x22c   :  { %v489_v38 = vmul.f32 %v1334_v14, %v455_v34  ;;  %v450_v55 = vpop.permute.xlu0 %449  ;;  %766 = vmatprep.subr.mxu0 %v1092_v47  ;;  %835 = vmatprep.subr.mxu1 %v521_v57 }
 0x22d   :  { %v453_v6 = vsel %vm451_vm6, %v446_v42, %v450_v55  ;;  %v459_v60 = vsel %vm451_vm6, %v450_v55, %v438_v39  ;;  %767 = vmatpush1.msra.mxu0 %v1086_v45  ;;  %836 = vmatpush1.msra.mxu1 %v520_v50  ;;  %v1691_v39 = vld [vmem:[#allocation23_spill] sm:$0xff] }
 0x22e   :  { %v487_v59 = vmul.f32 %v1342_v21, %v459_v60  ;;  %v490_v11 = vmul.f32 %v1345_v23, %v453_v6  ;;  %837 = vmatprep.subr.mxu1 %v517_v31  ;;  %v382_v47 = vpop.permute.xlu1 %381  ;;  %768 = vmatprep.subr.mxu0 %v488_v58  ;;  %v1680_v23 = vld [vmem:[#allocation9_spill] sm:$0xff]  ;;  %v1695_v6 = vld [vmem:[#allocation8_spill] sm:$0xff] }
 0x22f   :  { %838 = vmatpush1.msra.mxu1 %v516_v4  ;;  %v1696_v60 = vld [vmem:[#allocation25_spill] sm:$0xff] }
 0x230   :  { %v386_v48 = vpop.permute.xlu0 %385  ;;  %769 = vmatpush1.msra.mxu0 %v487_v59  ;;  %839 = vmatprep.subr.mxu1 %v490_v11  ;;  %v725_v4 = vrot.slane %v1696_v60, %v1695_v6  ;;  %v1697_v59 = vld [vmem:[#allocation24_spill] sm:$0xff]  ;;  %v1698_v11 = vld [vmem:[#allocation30_spill] sm:$0xff] }
 0x231   :  { %v401_v14 = vsel %vm395_vm7, %v382_v47, %v386_v48  ;;  %770 = vmatprep.subr.mxu0 %v1339_v16  ;;  %840 = vmatpush1.msra.mxu1 %v489_v38 }
 0x232   :  { %v432_v45 = vmul.f32 %v1364_v51, %v401_v14  ;;  %841 = vmatprep.subr.mxu1 %v1360_v43  ;;  %v390_v46 = vpop.permute.xlu1 %389  ;;  %771 = vmatpush1.msra.mxu0 %v1357_v40  ;;  %v1700_v14 = vld [vmem:[#allocation27_spill] sm:$0xff] }
 0x233   :  { %v399_v21 = vsel %vm395_vm7, %v386_v48, %v390_v46  ;;  %842 = vmatpush1.msra.mxu1 %v1350_v30  ;;  %v1699_v48 = vld [vmem:[#allocation28_spill] sm:$0xff] }
 0x234   :  { %v433_v29 = vmul.f32 %v1680_v23, %v399_v21  ;;  %v394_v54 = vpop.permute.xlu0 %393  ;;  %772 = vmatprep.subr.mxu0 %v432_v45  ;;  %v733_v45 = vrot.slane %v1696_v60, %v1220_v3  ;;  %v1701_v21 = vld [vmem:[#allocation26_spill] sm:$0xff] }
 0x235   :  { %v397_v16 = vsel %vm395_vm7, %v390_v46, %v394_v54  ;;  %v403_v51 = vsel %vm395_vm7, %v394_v54, %v382_v47 }
 0x236   :  { %v431_v43 = vmul.f32 %v1681_v0, %v403_v51  ;;  %v434_v15 = vmul.f32 %v1682_v5, %v397_v16  ;;  %v326_v40 = vpop.permute.xlu1 %325 }
 0x238   :  { %v330_v9 = vpop.permute.xlu0 %329  ;;  %773 = vmatpush1.msra.mxu0 %v431_v43  ;;  %843 = vmatprep.subr.mxu1 %v434_v15 }
 0x239   :  { %v345_v30 = vsel %vm339_vm8, %v326_v40, %v330_v9  ;;  %774 = vmatprep.subr.mxu0 %v1683_v10  ;;  %844 = vmatpush1.msra.mxu1 %v433_v29  ;;  %v746_v10 = vld [vmem:[%s1639_s4] sm:$0xff]  ;;  %s963_s4 = scalar_lea.vmem %s905_s26, 512 }
 0x23a   :  { %v376_v13 = vmul.f32 %v1684_v49, %v345_v30  ;;  %845 = vmatprep.subr.mxu1 %v1685_v35  ;;  %v334_v7 = vpop.permute.xlu1 %333  ;;  %775 = vmatpush1.msra.mxu0 %v1686_v19  ;;  %v1704_v35 = vld [vmem:[#allocation32_spill] sm:$0xff]  ;;  %p964_p5 = scmp.ne.s32.totalorder %s905_s26, %s963_s4  ;;  %p969_p7 = scmp.lt.s32.totalorder %s963_s4, %s963_s4 }
 0x23b   :  { %v343_v20 = vsel %vm339_vm8, %v330_v9, %v334_v7  ;;  %846 = vmatpush1.msra.mxu1 %v1687_v18  ;;  %v1703_v9 = vld [vmem:[#allocation29_spill] sm:$0xff] }
 0x23c   :  { %v377_v28 = vmul.f32 %v1400_v25, %v343_v20  ;;  %v338_v17 = vpop.permute.xlu0 %337  ;;  %776 = vmatprep.subr.mxu0 %v376_v13  ;;  %v1690_v25 = vld [vmem:[#allocation17_spill] sm:$0xff]  ;;  %p970_p8 = por %p969_p7, %p968_p6 }
 0x23d   :  { %v341_v22 = vsel %vm339_vm8, %v334_v7, %v338_v17  ;;  %v347_v26 = vsel %vm339_vm8, %v338_v17, %v326_v40 }
 0x23e   :  { %v375_v32 = vmul.f32 %v1688_v27, %v347_v26  ;;  %v378_v62 = vmul.f32 %v1689_v33, %v341_v22  ;;  %v269_v24 = vpop.permute.xlu1 %268  ;;  %p971_p9 = pnand %p970_p8, %p964_p5 }
 0x240   :  { %v273_v36 = vpop.permute.xlu0 %272  ;;  %777 = vmatpush1.msra.mxu0 %v375_v32  ;;  %847 = vmatprep.subr.mxu1 %v378_v62 }
 0x241   :  { %v290_v41 = vsel %vm284_vm9, %v269_v24, %v273_v36  ;;  %778 = vmatprep.subr.mxu0 %v1690_v25  ;;  %848 = vmatpush1.msra.mxu1 %v377_v28 }
 0x242   :  { %v320_v63 = vmul.f32 %v1691_v39, %v290_v41  ;;  %849 = vmatprep.subr.mxu1 %v1692_v37  ;;  %v277_v44 = vpop.permute.xlu1 %276  ;;  %779 = vmatpush1.msra.mxu0 %v1693_v8 }
 0x243   :  { %v288_v52 = vsel %vm284_vm9, %v273_v36, %v277_v44  ;;  %850 = vmatpush1.msra.mxu1 %v1694_v53 }
 0x244   :  { %v321_v58 = vmul.f32 %v1433_v12, %v288_v52  ;;  %v281_v42 = vpop.permute.xlu0 %280  ;;  %780 = vmatprep.subr.mxu0 %v320_v63 }
 0x245   :  { %v286_v57 = vsel %vm284_vm9, %v277_v44, %v281_v42  ;;  %v292_v34 = vsel %vm284_vm9, %v281_v42, %v269_v24 }
 0x246   :  { %v319_v50 = vmul.f32 %v1441_v56, %v292_v34  ;;  %v322_v38 = vmul.f32 %v1444_v1, %v286_v57  ;;  %v693_v55 = vpop.permute.xlu1 %692  ;;  %v729_v1 = vrot.slane %v1696_v60, %v1217_v2  ;;  %v1702_v2 = vld [vmem:[#allocation31_spill] sm:$0xff] }
 0x248   :  { %v697_v31 = vpop.permute.xlu0 %696  ;;  %781 = vmatpush1.msra.mxu0 %v319_v50  ;;  %851 = vmatprep.subr.mxu1 %v322_v38 }
 0x249   :  { %v712_v12 = vsel %vm706_vm10, %v693_v55, %v697_v31  ;;  %782 = vmatprep.subr.mxu0 %v1697_v59  ;;  %852 = vmatpush1.msra.mxu1 %v321_v58 }
 0x24a   :  { %v742_v47 = vmul.f32 %v1698_v11, %v712_v12  ;;  %853 = vmatprep.subr.mxu1 %v1699_v48  ;;  %v701_v56 = vpop.permute.xlu1 %700  ;;  %783 = vmatpush1.msra.mxu0 %v1700_v14 }
 0x24b   :  { %v710_v46 = vsel %vm706_vm10, %v697_v31, %v701_v56  ;;  %854 = vmatpush1.msra.mxu1 %v1701_v21 }
 0x24c   :  { %v743_v23 = vmul.f32 %v725_v4, %v710_v46  ;;  %v705_v29 = vpop.permute.xlu0 %704 }
 0x24d   :  { %v708_v54 = vsel %vm706_vm10, %v701_v56, %v705_v29  ;;  %v714_v16 = vsel %vm706_vm10, %v705_v29, %v693_v55 }
 0x24e   :  { %v744_v51 = vmul.f32 %v729_v1, %v708_v54  ;;  %v745_v0 = vmul.f32 %v733_v45, %v714_v16  ;;  %v699_v43 = vpop.permute.xlu1 %698  ;;  %812 = vmatprep.subr.mxu0 %v743_v23 }
 0x24f   :  { %v709_v3 = vsel %vm706_vm10, %v1702_v2, %v699_v43  ;;  %813 = vmatpush2.msra.mxu0 %v742_v47 }
 0x250   :  { %v739_v5 = vmul.f32 %v725_v4, %v709_v3  ;;  %v703_v15 = vpop.permute.xlu0 %702  ;;  %883 = vmatprep.subr.mxu1 %v745_v0 }
 0x251   :  { %v707_v40 = vsel %vm706_vm10, %v699_v43, %v703_v15  ;;  %v713_v30 = vsel %vm706_vm10, %v703_v15, %v1703_v9  ;;  %884 = vmatpush2.msra.mxu1 %v744_v51 }
 0x252   :  { %v740_v49 = vmul.f32 %v729_v1, %v707_v40  ;;  %v741_v13 = vmul.f32 %v733_v45, %v713_v30  ;;  %814 = vmatprep.subr.mxu0 %v739_v5 }
 0x253   :  { %815 = vmatpush2.msra.mxu0 %v1704_v35 }
 0x254   :  { %817 = vmatmul.mubr.f32.vlgmr.msra.gmra.mxu0 %v746_v10  ;;  %885 = vmatprep.subr.mxu1 %v741_v13 }
 0x255   :  { %886 = vmatpush2.msra.mxu1 %v740_v49 }
 0x256   :  { %888 = vmatmul.mubr.f32.vlgmr.msra.gmra.mxu1 %v746_v10 }
 0x314   :  { %v818_v7 = vpop.f32.mrf.mxu0 }
 0x315   :  { %894 = vst [vmem:[#allocation5] sm:$0xff] %v818_v7 }
 0x316   :  { %v820_v61 = vpop.f32.mrf.mxu0  ;;  %v889_v19 = vpop.f32.mrf.mxu1 }
 0x317   :  { %895 = vst [vmem:[#allocation5 + $0x8] sm:$0xff] %v820_v61  ;;  %896 = vst [vmem:[#allocation5 + $0x10] sm:$0xff] %v889_v19 }
 0x318   :  { %v891_v20 = vpop.f32.mrf.mxu1 }
 0x319   :  { %897 = vst [vmem:[#allocation5 + $0x18] sm:$0xff] %v891_v20 }
 0x31a   :  { %974 = shalt.err (!%p971_p9)
}
 0x31b   :  { %907 = dma.vmem_to_hbm [thread:$0]  %s905_s26, 512, %s1641_s6, [#allocation4]  }
 0x31c   :  { %985 = dma.done.wait [#allocation4], 512  }
 0x31d   :  { %986 = vsyncadd [#allocation4], 4294966784 }
 0x31e   :  { %911 = vsyncpa [#allocation3], 1 }
 0x31f   :  { %912 = vsyncpa [#allocation4], 1 }

</bundles_post_ra>
